<compile_context>
chip_gen: v7x
topology: tpu7x:2x2x1
jax: 0.10.0
libtpu: 0.0.40
codegen_flags: <defaults>
</compile_context>

<pallas_src>
import jax
import jax.numpy as jnp
from jax.experimental import pallas as pl
from jax.experimental.pallas import tpu as pltpu


def _vae_kernel(x_ref, w_ref, b_ref, eps_ref, recon_ref, mu_ref, logvar_ref):
    # Single fused matmul: y = x @ [Wmu | Wlv] + [bmu | blv]  -> (TILE_M, 2D)
    y = jnp.dot(x_ref[...], w_ref[...],
                preferred_element_type=jnp.float32) + b_ref[...]

    D = mu_ref.shape[-1]
    mu = y[:, :D]          # lane-aligned slice (D is a multiple of 128)
    logvar = y[:, D:]

    std = jnp.exp(0.5 * logvar)
    # Faithful to the PyTorch code: mu + eps + std (additive, NOT mu + eps*std).
    recon_ref[...] = mu + eps_ref[...] + std     # decoder = identity
    mu_ref[...] = mu
    logvar_ref[...] = logvar


def fuse_params(params):
    """Fold encoder Linear into fc1/fc2 and concat into one (D, 2D) weight.

    Weights are stored pre-transposed as (D_in, D_out), so
      mu = (x @ We + be) @ W1 + b1 = x @ (We @ W1) + (be @ W1 + b1), etc.
    """
    we, be = params["we"], params["be"]
    w1, b1 = params["w1"], params["b1"]
    w2, b2 = params["w2"], params["b2"]
    wmu = we @ w1
    wlv = we @ w2
    bmu = be @ w1 + b1
    blv = be @ w2 + b2
    w_fused = jnp.concatenate([wmu, wlv], axis=1)   # (D, 2D)
    b_fused = jnp.concatenate([bmu, blv], axis=1)   # (1, 2D)
    return w_fused, b_fused


def _pick_tile_m(n):
    """Largest row tile (<=512, multiple of 8) that evenly divides n."""
    for t in (512, 256, 128, 64, 32, 16, 8):
        if n % t == 0:
            return t
    return n   # block == full array dim is always legal


def v_autoencoder_forward(x, w_fused, b_fused, eps, *, compute_dtype=jnp.float32):
    """x: (N, D) f32; w_fused: (D, 2D); b_fused: (1, 2D); eps: (N, D) in [0,1)."""
    N, D = x.shape
    assert w_fused.shape == (D, 2 * D)
    assert b_fused.shape == (1, 2 * D)
    assert eps.shape == (N, D)

    tile_m = _pick_tile_m(N)
    grid = (N // tile_m,)

    xk = x.astype(compute_dtype)
    wk = w_fused.astype(compute_dtype)
    bk = b_fused.astype(jnp.float32)      # bias added after f32 accumulation
    epsk = eps.astype(jnp.float32)

    row_spec = pl.BlockSpec((tile_m, D), lambda i: (i, 0))
    const_w = pl.BlockSpec((D, 2 * D), lambda i: (0, 0))   # VMEM-resident weights
    const_b = pl.BlockSpec((1, 2 * D), lambda i: (0, 0))

    recon, mu, logvar = pl.pallas_call(
        _vae_kernel,
        out_shape=(
            jax.ShapeDtypeStruct((N, D), jnp.float32),
            jax.ShapeDtypeStruct((N, D), jnp.float32),
            jax.ShapeDtypeStruct((N, D), jnp.float32),
        ),
        grid_spec=pltpu.PrefetchScalarGridSpec(
            num_scalar_prefetch=0,
            grid=grid,
            in_specs=[
                row_spec,   # x tile
                const_w,    # fused weights
                const_b,    # fused bias
                row_spec,   # eps tile
            ],
            out_specs=[row_spec, row_spec, row_spec],
        ),
        compiler_params=pltpu.CompilerParams(
            dimension_semantics=("parallel",)),
    )(xk, wk, bk, epsk)
    return recon, mu, logvar


def init_params(key, D):
    """Deterministic init; Linear weights stored pre-transposed as (D_in, D_out)."""
    ks = jax.random.split(key, 6)
    bound = 1.0 / jnp.sqrt(D)
    u = lambda k, shape: jax.random.uniform(k, shape, jnp.float32, -bound, bound)
    return {
        "we": u(ks[0], (D, D)), "be": u(ks[1], (1, D)),
        "w1": u(ks[2], (D, D)), "b1": u(ks[3], (1, D)),
        "w2": u(ks[4], (D, D)), "b2": u(ks[5], (1, D)),
    }


if __name__ == "__main__":
    N, D = 256, 128    # batch of feature vectors, input_dim = 128
    key = jax.random.PRNGKey(0)
    kx, kp, keps = jax.random.split(key, 3)
    x = jax.random.normal(kx, (N, D), dtype=jnp.float32)
    params = init_params(kp, D)
    eps = jax.random.uniform(keps, (N, D), dtype=jnp.float32)   # torch.rand_like -> U[0,1)

    # Fold encoder into fc1/fc2 once (reused across calls).
    w_fused, b_fused = fuse_params(params)

    recon, mu, logvar = v_autoencoder_forward(x, w_fused, b_fused, eps)
    jax.block_until_ready((recon, mu, logvar))

    # Pure-JAX reference of the original (un-fused) three-Linear forward.
    h_ref = x @ params["we"] + params["be"]
    mu_ref = h_ref @ params["w1"] + params["b1"]
    lv_ref = h_ref @ params["w2"] + params["b2"]
    std_ref = jnp.exp(0.5 * lv_ref)
    recon_ref = mu_ref + eps + std_ref

    assert jnp.allclose(mu, mu_ref, atol=1e-3, rtol=1e-3), \
        float(jnp.max(jnp.abs(mu - mu_ref)))
    assert jnp.allclose(logvar, lv_ref, atol=1e-3, rtol=1e-3), \
        float(jnp.max(jnp.abs(logvar - lv_ref)))
    assert jnp.allclose(recon, recon_ref, atol=1e-3, rtol=1e-3), \
        float(jnp.max(jnp.abs(recon - recon_ref)))

    print("KERNEL_OK")
</pallas_src>

<mosaic_0001>
module attributes {stable_mosaic.version = 11 : i64} {
  func.func @_vae_kernel(%arg0: i32, %arg1: memref<256x128xf32, #tpu.memory_space<vmem>>, %arg2: memref<128x256xf32, #tpu.memory_space<vmem>>, %arg3: memref<1x256xf32, #tpu.memory_space<vmem>>, %arg4: memref<256x128xf32, #tpu.memory_space<vmem>>, %arg5: memref<256x128xf32, #tpu.memory_space<vmem>>, %arg6: memref<256x128xf32, #tpu.memory_space<vmem>>, %arg7: memref<256x128xf32, #tpu.memory_space<vmem>>) attributes {dimension_semantics = [#tpu.dimension_semantics<parallel>], iteration_bounds = array<i64: 1>, scalar_prefetch = 0 : i64, scratch_operands = 0 : i64, tpu.core_type = #tpu.core_type<tc>, window_params = [{transform_indices = @transform_0, window_bounds = array<i64: 256, 128>}, {pipeline_mode = #tpu.pipeline_mode<synchronous>, transform_indices = @transform_1, window_bounds = array<i64: 128, 256>}, {pipeline_mode = #tpu.pipeline_mode<synchronous>, transform_indices = @transform_2, window_bounds = array<i64: 1, 256>}, {transform_indices = @transform_3, window_bounds = array<i64: 256, 128>}, {transform_indices = @transform_4, window_bounds = array<i64: 256, 128>}, {transform_indices = @transform_5, window_bounds = array<i64: 256, 128>}, {transform_indices = @transform_6, window_bounds = array<i64: 256, 128>}]} {
    %c0 = arith.constant 0 : index
    %c0_0 = arith.constant 0 : index
    %0 = vector.load %arg1[%c0, %c0_0] : memref<256x128xf32, #tpu.memory_space<vmem>>, vector<256x128xf32>
    %c0_1 = arith.constant 0 : index
    %c0_2 = arith.constant 0 : index
    %1 = vector.load %arg2[%c0_1, %c0_2] : memref<128x256xf32, #tpu.memory_space<vmem>>, vector<128x256xf32>
    %cst = arith.constant dense<0.000000e+00> : vector<256x256xf32>
    %2 = tpu.matmul %0, %1, %cst {dimension_numbers = #tpu.dot_dimension_numbers<[1], [0], [0], [1], [0, 0, 1, 1], [], []>} : vector<256x128xf32>, vector<128x256xf32>, vector<256x256xf32> -> vector<256x256xf32>
    %c0_3 = arith.constant 0 : index
    %c0_4 = arith.constant 0 : index
    %3 = vector.load %arg3[%c0_3, %c0_4] : memref<1x256xf32, #tpu.memory_space<vmem>>, vector<1x256xf32>
    %4 = vector.broadcast %3 : vector<1x256xf32> to vector<256x256xf32>
    %5 = arith.addf %2, %4 : vector<256x256xf32>
    %6 = vector.extract_strided_slice %5 {offsets = [0, 0], sizes = [256, 128], strides = [1, 1]} : vector<256x256xf32> to vector<256x128xf32>
    %7 = vector.extract_strided_slice %5 {offsets = [0, 128], sizes = [256, 128], strides = [1, 1]} : vector<256x256xf32> to vector<256x128xf32>
    %cst_5 = arith.constant 5.000000e-01 : f32
    %8 = vector.broadcast %cst_5 : f32 to vector<256x128xf32>
    %9 = arith.mulf %8, %7 : vector<256x128xf32>
    %10 = math.exp %9 : vector<256x128xf32>
    %c0_6 = arith.constant 0 : index
    %c0_7 = arith.constant 0 : index
    %11 = vector.load %arg4[%c0_6, %c0_7] : memref<256x128xf32, #tpu.memory_space<vmem>>, vector<256x128xf32>
    %12 = arith.addf %6, %11 : vector<256x128xf32>
    %13 = arith.addf %12, %10 : vector<256x128xf32>
    %c0_8 = arith.constant 0 : index
    %c0_9 = arith.constant 0 : index
    %14 = vector.load %arg5[%c0_8, %c0_9] : memref<256x128xf32, #tpu.memory_space<vmem>>, vector<256x128xf32>
    tpu.vector_store %arg5[%c0_8, %c0_9], %13 {strides = array<i32>} : memref<256x128xf32, #tpu.memory_space<vmem>>, vector<256x128xf32>,
    %c0_10 = arith.constant 0 : index
    %c0_11 = arith.constant 0 : index
    %15 = vector.load %arg6[%c0_10, %c0_11] : memref<256x128xf32, #tpu.memory_space<vmem>>, vector<256x128xf32>
    tpu.vector_store %arg6[%c0_10, %c0_11], %6 {strides = array<i32>} : memref<256x128xf32, #tpu.memory_space<vmem>>, vector<256x128xf32>,
    %c0_12 = arith.constant 0 : index
    %c0_13 = arith.constant 0 : index
    %16 = vector.load %arg7[%c0_12, %c0_13] : memref<256x128xf32, #tpu.memory_space<vmem>>, vector<256x128xf32>
    tpu.vector_store %arg7[%c0_12, %c0_13], %7 {strides = array<i32>} : memref<256x128xf32, #tpu.memory_space<vmem>>, vector<256x128xf32>,
    return
  }
  func.func @transform_0(%arg0: i32) -> (i32, i32) {
    %c0_i32 = arith.constant 0 : i32
    %c0_i32_0 = arith.constant 0 : i32
    return %arg0, %c0_i32 : i32, i32
  }
  func.func @transform_1(%arg0: i32) -> (i32, i32) {
    %c0_i32 = arith.constant 0 : i32
    %c0_i32_0 = arith.constant 0 : i32
    %c0_i32_1 = arith.constant 0 : i32
    return %c0_i32, %c0_i32_0 : i32, i32
  }
  func.func @transform_2(%arg0: i32) -> (i32, i32) {
    %c0_i32 = arith.constant 0 : i32
    %c0_i32_0 = arith.constant 0 : i32
    %c0_i32_1 = arith.constant 0 : i32
    return %c0_i32, %c0_i32_0 : i32, i32
  }
  func.func @transform_3(%arg0: i32) -> (i32, i32) {
    %c0_i32 = arith.constant 0 : i32
    %c0_i32_0 = arith.constant 0 : i32
    return %arg0, %c0_i32 : i32, i32
  }
  func.func @transform_4(%arg0: i32) -> (i32, i32) {
    %c0_i32 = arith.constant 0 : i32
    %c0_i32_0 = arith.constant 0 : i32
    return %arg0, %c0_i32 : i32, i32
  }
  func.func @transform_5(%arg0: i32) -> (i32, i32) {
    %c0_i32 = arith.constant 0 : i32
    %c0_i32_0 = arith.constant 0 : i32
    return %arg0, %c0_i32 : i32, i32
  }
  func.func @transform_6(%arg0: i32) -> (i32, i32) {
    %c0_i32 = arith.constant 0 : i32
    %c0_i32_0 = arith.constant 0 : i32
    return %arg0, %c0_i32 : i32, i32
  }
}

</mosaic_0001>

<bundles_post_ra>
// kernel: tpu_custom_call.1
= control target key start
LH: loop header
LB: loop body
LE: loop exit
PB: predicated region body
PF: predicated region fallthrough
CT: control target
= control target key end

     0   :  { %12 = vsyncpa [#allocation3], 0  ;;  %s1370_s0 = inlined_call_operand.hbm [shape: f32[256,128], index: 0, kind: input, shape index: {}]   ;;  %s1371_s1 = inlined_call_operand.hbm [shape: f32[128,256], index: 1, kind: input, shape index: {}]   ;;  %s1372_s2 = inlined_call_operand.vmem [shape: f32[1,256], index: 2, kind: input, shape index: {}]   ;;  %s1373_s3 = inlined_call_operand.hbm [shape: f32[256,128], index: 3, kind: input, shape index: {}]   ;;  %s1374_s4 = inlined_call_operand.hbm [shape: f32[256,128], index: 4, kind: output, shape index: {0}]   ;;  %s1375_s5 = inlined_call_operand.hbm [shape: f32[256,128], index: 5, kind: output, shape index: {1}]   ;;  %s1376_s6 = inlined_call_operand.hbm [shape: f32[256,128], index: 6, kind: output, shape index: {2}]  }
   0x1   :  { %13 = vsyncpa [#allocation6], 0 }
   0x2   :  { %14 = vsyncpa [#allocation4], 0 }
   0x3   :  { %15 = vsyncpa [#allocation10], 0  ;;  %s996_s21 = smov [#allocation5]   ;;  %s856_s25 = scalar_lea.hbm %s1371_s1, 4096 }
   0x4   :  { %s33_s22 = sshll.u32 %s996_s21, 4  ;;  %p857_p0 = scmp.ne.s32.totalorder %s1371_s1, %s856_s25  ;;  %s34_s22 = int_to_ptr.vmem [resolvable:$true] %s33_s22 }
   0x5   :  { %p860_p1 = scmp.lt.u32.totalorder %s856_s25, %s1371_s1 }
   0x7   :  { %p862_p2 = pnand %p860_p1, %p857_p0 }
   0x9   :  { %865 = shalt.err (!%p862_p2)
}
   0xa   :  { %s866_s30 = scalar_lea.vmem %s34_s22, 4096  ;;  %p871_p4 = scmp.lt.s32.totalorder %s34_s22, %s34_s22 }
   0xb   :  { %p867_p3 = scmp.ne.s32.totalorder %s34_s22, %s866_s30  ;;  %p872_p5 = scmp.lt.s32.totalorder %s866_s30, %s866_s30 }
   0xd   :  { %p873_p6 = por %p872_p5, %p871_p4 }
   0xf   :  { %p874_p7 = pnand %p873_p6, %p867_p3 }
  0x11   :  { %877 = shalt.err (!%p874_p7)
}
  0x12   :  { %s997_s7 = smov 256   ;;  %s998_s8 = smov 16  }
  0x13   :  { %39 = dma.hbm_to_vmem [thread:$0]  %s1371_s1, 4096, %s34_s22, [#allocation6], %s997_s7, %s997_s7, %s998_s8  }
  0x14   :  { %s999_s11 = smov [#allocation2]   ;;  %s878_s15 = scalar_lea.hbm %s1370_s0, 4096 }
  0x15   :  { %s21_s12 = sshll.u32 %s999_s11, 4  ;;  %p879_p8 = scmp.ne.s32.totalorder %s1370_s0, %s878_s15  ;;  %s22_s12 = int_to_ptr.vmem [resolvable:$true] %s21_s12 }
  0x16   :  { %p882_p9 = scmp.lt.u32.totalorder %s878_s15, %s1370_s0 }
  0x18   :  { %p884_p10 = pnand %p882_p9, %p879_p8 }
  0x1a   :  { %887 = shalt.err (!%p884_p10)
}
  0x1b   :  { %s888_s20 = scalar_lea.vmem %s22_s12, 4096  ;;  %p893_p12 = scmp.lt.s32.totalorder %s22_s12, %s22_s12 }
  0x1c   :  { %p889_p11 = scmp.ne.s32.totalorder %s22_s12, %s888_s20  ;;  %p894_p13 = scmp.lt.s32.totalorder %s888_s20, %s888_s20 }
  0x1e   :  { %p895_p0 = por %p894_p13, %p893_p12 }
  0x20   :  { %p896_p1 = pnand %p895_p0, %p889_p11 }
  0x22   :  { %899 = shalt.err (!%p896_p1)
}
  0x23   :  { %s1000_s1 = smov 128   ;;  %s1001_s21 = smov 8  }
  0x24   :  { %27 = dma.hbm_to_vmem [thread:$0]  %s1370_s0, 4096, %s22_s12, [#allocation3], %s1000_s1, %s1000_s1, %s1001_s21  }
  0x25   :  { %s1002_s24 = smov [#allocation7]   ;;  %s900_s28 = scalar_lea.hbm %s1373_s3, 4096 }
  0x26   :  { %s47_s25 = sshll.u32 %s1002_s24, 4  ;;  %p901_p2 = scmp.ne.s32.totalorder %s1373_s3, %s900_s28  ;;  %s48_s25 = int_to_ptr.vmem [resolvable:$true] %s47_s25 }
  0x27   :  { %p904_p3 = scmp.lt.u32.totalorder %s900_s28, %s1373_s3 }
  0x29   :  { %p906_p4 = pnand %p904_p3, %p901_p2 }
  0x2b   :  { %909 = shalt.err (!%p906_p4)
}
  0x2c   :  { %s910_s9 = scalar_lea.vmem %s48_s25, 4096  ;;  %p915_p6 = scmp.lt.s32.totalorder %s48_s25, %s48_s25 }
  0x2d   :  { %p911_p5 = scmp.ne.s32.totalorder %s48_s25, %s910_s9  ;;  %p916_p7 = scmp.lt.s32.totalorder %s910_s9, %s910_s9 }
  0x2f   :  { %p917_p8 = por %p916_p7, %p915_p6 }
  0x31   :  { %p918_p9 = pnand %p917_p8, %p911_p5 }
  0x33   :  { %921 = shalt.err (!%p918_p9)
}
  0x34   :  { %53 = dma.hbm_to_vmem [thread:$0]  %s1373_s3, 4096, %s48_s25, [#allocation6], %s1000_s1, %s1000_s1, %s1001_s21  }
  0x35   :  { %988 = dma.done.wait [#allocation3], 4096  }
  0x36   :  { %989 = vsyncadd [#allocation3], 4294963200 }
  0x37   :  { %990 = dma.done.wait [#allocation6], 8192  }
  0x38   :  { %991 = vsyncadd [#allocation6], 4294959104  ;;  %v1003_v0 = vmov 0.0   ;;  %v96_v1 = vld [vmem:[#allocation5 + $0x8] sm:$0xff]  ;;  %v98_v2 = vld [vmem:[#allocation5 + $0x18] sm:$0xff]  ;;  %s1005_s13 = smov [#allocation11]  }
  0x39   :  { %203 = vmatprep.mubr.f32.mxu0 %v1003_v0  ;;  %299 = vmatprep.mubr.f32.mxu1 %v1003_v0  ;;  %v95_v3 = vld [vmem:[#allocation5] sm:$0xff]  ;;  %v733_v4 = vpack.c.bf16 %v98_v2, %v96_v1  ;;  %v97_v5 = vld [vmem:[#allocation5 + $0x10] sm:$0xff]  ;;  %v100_v6 = vld [vmem:[#allocation5 + $0x28] sm:$0xff]  ;;  %s713_s14 = sshll.u32 %s1005_s13, 4  ;;  %s1303_s14 = int_to_ptr.vmem [resolvable:$true] %s713_s14 }
  0x3a   :  { %v102_v7 = vld [vmem:[#allocation5 + $0x38] sm:$0xff]  ;;  %v735_v8 = vpack.c.bf16 %v97_v5, %v95_v3  ;;  %v99_v10 = vld [vmem:[#allocation5 + $0x20] sm:$0xff]  ;;  %v101_v11 = vld [vmem:[#allocation5 + $0x30] sm:$0xff] }
  0x3b   :  { %v737_v9 = vpack.c.bf16 %v102_v7, %v100_v6  ;;  %v104_v12 = vld [vmem:[#allocation5 + $0x48] sm:$0xff]  ;;  %734 = vmatprep.subr.bf16.mxu0 %v733_v4  ;;  %765 = vmatprep.subr.bf16.mxu1 %v733_v4  ;;  %v106_v13 = vld [vmem:[#allocation5 + $0x58] sm:$0xff]  ;;  %v739_v14 = vpack.c.bf16 %v101_v11, %v99_v10  ;;  %v103_v16 = vld [vmem:[#allocation5 + $0x40] sm:$0xff] }
  0x3c   :  { %736 = vmatpush1.bf16.msra.mxu0 %v735_v8  ;;  %773 = vmatpush1.bf16.msra.mxu1 %v735_v8  ;;  %v741_v15 = vpack.c.bf16 %v106_v13, %v104_v12  ;;  %v105_v17 = vld [vmem:[#allocation5 + $0x50] sm:$0xff]  ;;  %v108_v18 = vld [vmem:[#allocation5 + $0x68] sm:$0xff]  ;;  %v110_v19 = vld [vmem:[#allocation5 + $0x78] sm:$0xff] }
  0x3d   :  { %738 = vmatprep.subr.bf16.mxu0 %v737_v9  ;;  %766 = vmatprep.subr.bf16.mxu1 %v737_v9  ;;  %v743_v20 = vpack.c.bf16 %v105_v17, %v103_v16  ;;  %v745_v21 = vpack.c.bf16 %v110_v19, %v108_v18  ;;  %v107_v22 = vld [vmem:[#allocation5 + $0x60] sm:$0xff]  ;;  %v109_v23 = vld [vmem:[#allocation5 + $0x70] sm:$0xff]  ;;  %v112_v24 = vld [vmem:[#allocation5 + $0x88] sm:$0xff]  ;;  %v129_v18 = vlaneseq }
  0x3e   :  { %v114_v25 = vld [vmem:[#allocation5 + $0x98] sm:$0xff]  ;;  %v747_v26 = vpack.c.bf16 %v109_v23, %v107_v22  ;;  %v111_v28 = vld [vmem:[#allocation5 + $0x80] sm:$0xff]  ;;  %v113_v29 = vld [vmem:[#allocation5 + $0x90] sm:$0xff] }
  0x3f   :  { %v749_v27 = vpack.c.bf16 %v114_v25, %v112_v24  ;;  %v116_v30 = vld [vmem:[#allocation5 + $0xa8] sm:$0xff]  ;;  %v118_v31 = vld [vmem:[#allocation5 + $0xb8] sm:$0xff]  ;;  %v751_v32 = vpack.c.bf16 %v113_v29, %v111_v28  ;;  %v115_v34 = vld [vmem:[#allocation5 + $0xa0] sm:$0xff]  ;;  %v130_v19 = vshrl.u32 %v129_v18, 7 }
  0x40   :  { %740 = vmatpush1.bf16.msra.mxu0 %v739_v14  ;;  %774 = vmatpush1.bf16.msra.mxu1 %v739_v14  ;;  %v753_v33 = vpack.c.bf16 %v118_v31, %v116_v30  ;;  %v117_v35 = vld [vmem:[#allocation5 + $0xb0] sm:$0xff]  ;;  %v120_v36 = vld [vmem:[#allocation5 + $0xc8] sm:$0xff]  ;;  %v122_v37 = vld [vmem:[#allocation5 + $0xd8] sm:$0xff] }
  0x41   :  { %742 = vmatprep.subr.bf16.mxu0 %v741_v15  ;;  %767 = vmatprep.subr.bf16.mxu1 %v741_v15  ;;  %v755_v38 = vpack.c.bf16 %v117_v35, %v115_v34  ;;  %v757_v39 = vpack.c.bf16 %v122_v37, %v120_v36  ;;  %v119_v40 = vld [vmem:[#allocation5 + $0xc0] sm:$0xff]  ;;  %v121_v41 = vld [vmem:[#allocation5 + $0xd0] sm:$0xff]  ;;  %v124_v42 = vld [vmem:[#allocation5 + $0xe8] sm:$0xff]  ;;  %v135_v22 = vsub.s32 1, %v130_v19 }
  0x42   :  { %v126_v43 = vld [vmem:[#allocation5 + $0xf8] sm:$0xff]  ;;  %v759_v44 = vpack.c.bf16 %v121_v41, %v119_v40  ;;  %v123_v46 = vld [vmem:[#allocation5 + $0xe0] sm:$0xff]  ;;  %v125_v47 = vld [vmem:[#allocation5 + $0xf0] sm:$0xff] }
  0x43   :  { %v761_v45 = vpack.c.bf16 %v126_v43, %v124_v42  ;;  %v763_v48 = vpack.c.bf16 %v125_v47, %v123_v46  ;;  %v63_v49 = vld [vmem:[#allocation2] sm:$0xff]  ;;  %v64_v51 = vld [vmem:[#allocation2 + $0x8] sm:$0xff]  ;;  %v65_v53 = vld [vmem:[#allocation2 + $0x10] sm:$0xff] }
  0x44   :  { %744 = vmatpush1.bf16.msra.mxu0 %v743_v20  ;;  %775 = vmatpush1.bf16.msra.mxu1 %v743_v20  ;;  %v79_v50 = vld [vmem:[#allocation2 + $0x80] sm:$0xff]  ;;  %v80_v52 = vld [vmem:[#allocation2 + $0x88] sm:$0xff]  ;;  %v81_v54 = vld [vmem:[#allocation2 + $0x90] sm:$0xff]  ;;  %v131_v20 = vsub.s32 0, %v130_v19 }
  0x45   :  { %746 = vmatprep.subr.bf16.mxu0 %v745_v21  ;;  %768 = vmatprep.subr.bf16.mxu1 %v745_v21  ;;  %v66_v55 = vld [vmem:[#allocation2 + $0x18] sm:$0xff]  ;;  %v67_v57 = vld [vmem:[#allocation2 + $0x20] sm:$0xff]  ;;  %v68_v59 = vld [vmem:[#allocation2 + $0x28] sm:$0xff] }
  0x46   :  { %v82_v56 = vld [vmem:[#allocation2 + $0x98] sm:$0xff]  ;;  %v83_v58 = vld [vmem:[#allocation2 + $0xa0] sm:$0xff]  ;;  %v84_v60 = vld [vmem:[#allocation2 + $0xa8] sm:$0xff] }
  0x47   :  { %v69_v61 = vld [vmem:[#allocation2 + $0x30] sm:$0xff]  ;;  %v70_v63 = vld [vmem:[#allocation2 + $0x38] sm:$0xff]  ;;  %v71_v2 = vld [vmem:[#allocation2 + $0x40] sm:$0xff] }
  0x48   :  { %748 = vmatpush1.bf16.msra.mxu0 %v747_v26  ;;  %776 = vmatpush1.bf16.msra.mxu1 %v747_v26  ;;  %v85_v62 = vld [vmem:[#allocation2 + $0xb0] sm:$0xff]  ;;  %v86_v1 = vld [vmem:[#allocation2 + $0xb8] sm:$0xff]  ;;  %v87_v3 = vld [vmem:[#allocation2 + $0xc0] sm:$0xff] }
  0x49   :  { %750 = vmatprep.subr.bf16.mxu0 %v749_v27  ;;  %769 = vmatprep.subr.bf16.mxu1 %v749_v27  ;;  %v72_v4 = vld [vmem:[#allocation2 + $0x48] sm:$0xff]  ;;  %v73_v6 = vld [vmem:[#allocation2 + $0x50] sm:$0xff]  ;;  %v74_v8 = vld [vmem:[#allocation2 + $0x58] sm:$0xff] }
  0x4a   :  { %v88_v5 = vld [vmem:[#allocation2 + $0xc8] sm:$0xff]  ;;  %v89_v7 = vld [vmem:[#allocation2 + $0xd0] sm:$0xff]  ;;  %v90_v9 = vld [vmem:[#allocation2 + $0xd8] sm:$0xff] }
  0x4b   :  { %v75_v10 = vld [vmem:[#allocation2 + $0x60] sm:$0xff]  ;;  %v76_v12 = vld [vmem:[#allocation2 + $0x68] sm:$0xff]  ;;  %v77_v14 = vld [vmem:[#allocation2 + $0x70] sm:$0xff] }
  0x4c   :  { %752 = vmatpush1.bf16.msra.mxu0 %v751_v32  ;;  %777 = vmatpush1.bf16.msra.mxu1 %v751_v32  ;;  %v91_v11 = vld [vmem:[#allocation2 + $0xe0] sm:$0xff]  ;;  %v92_v13 = vld [vmem:[#allocation2 + $0xe8] sm:$0xff]  ;;  %v93_v15 = vld [vmem:[#allocation2 + $0xf0] sm:$0xff] }
  0x4d   :  { %754 = vmatprep.subr.bf16.mxu0 %v753_v33  ;;  %770 = vmatprep.subr.bf16.mxu1 %v753_v33  ;;  %v78_v16 = vld [vmem:[#allocation2 + $0x78] sm:$0xff]  ;;  %v127_v21 = vld [vmem:[%s1372_s2] sm:$0x3]  ;;  %v509_v19 = vld [vmem:[#allocation7 + $0x88] sm:$0xff]  ;;  %s1004_s2 = smov [#allocation9]  }
  0x4e   :  { %v94_v17 = vld [vmem:[#allocation2 + $0xf8] sm:$0xff]  ;;  %v1119_v23 = vrot.slane %v127_v21, %v131_v20  ;;  %v1121_v24 = vrot.slane %v127_v21, %v135_v22  ;;  %s701_s12 = sshll.u32 %s1004_s2, 4  ;;  %s1299_s12 = int_to_ptr.vmem [resolvable:$true] %s701_s12 }
  0x4f   :  { %s922_s15 = scalar_lea.vmem %s1299_s12, 4096  ;;  %p927_p11 = scmp.lt.s32.totalorder %s1299_s12, %s1299_s12 }
  0x50   :  { %756 = vmatpush1.bf16.msra.mxu0 %v755_v38  ;;  %778 = vmatpush1.bf16.msra.mxu1 %v755_v38  ;;  %p923_p10 = scmp.ne.s32.totalorder %s1299_s12, %s922_s15  ;;  %p928_p12 = scmp.lt.s32.totalorder %s922_s15, %s922_s15 }
  0x51   :  { %758 = vmatprep.subr.bf16.mxu0 %v757_v39  ;;  %771 = vmatprep.subr.bf16.mxu1 %v757_v39 }
  0x52   :  { %p929_p13 = por %p928_p12, %p927_p11 }
  0x54   :  { %760 = vmatpush1.bf16.msra.mxu0 %v759_v44  ;;  %779 = vmatpush1.bf16.msra.mxu1 %v759_v44  ;;  %p930_p0 = pnand %p929_p13, %p923_p10 }
  0x55   :  { %762 = vmatprep.subr.bf16.mxu0 %v761_v45  ;;  %772 = vmatprep.subr.bf16.mxu1 %v761_v45 }
  0x58   :  { %764 = vmatpush1.bf16.msra.mxu0 %v763_v48  ;;  %780 = vmatpush1.bf16.msra.mxu1 %v763_v48 }
  0x5b   :  { %204 = vmatmul.mubr.f32.vlgmr.msra.gmra.mrb[0].mxu0 %v63_v49  ;;  %300 = vmatmul.mubr.f32.vlgmr.msra.gmra.mrb[0].mxu1 %v79_v50 }
  0x5c   :  { %209 = vmatprep.mubr.f32.mxu0 %v1003_v0  ;;  %305 = vmatprep.mubr.f32.mxu1 %v1003_v0 }
  0x5f   :  { %210 = vmatmul.mubr.f32.gmra.mrb[2].mxu0 %v64_v51  ;;  %306 = vmatmul.mubr.f32.gmra.mrb[2].mxu1 %v80_v52 }
  0x60   :  { %215 = vmatprep.mubr.f32.mxu0 %v1003_v0  ;;  %311 = vmatprep.mubr.f32.mxu1 %v1003_v0 }
  0x63   :  { %216 = vmatmul.mubr.f32.gmra.mrb[4].mxu0 %v65_v53  ;;  %312 = vmatmul.mubr.f32.gmra.mrb[4].mxu1 %v81_v54 }
  0x64   :  { %221 = vmatprep.mubr.f32.mxu0 %v1003_v0  ;;  %317 = vmatprep.mubr.f32.mxu1 %v1003_v0 }
  0x67   :  { %222 = vmatmul.mubr.f32.gmra.mrb[6].mxu0 %v66_v55  ;;  %318 = vmatmul.mubr.f32.gmra.mrb[6].mxu1 %v82_v56 }
  0x68   :  { %227 = vmatprep.mubr.f32.mxu0 %v1003_v0  ;;  %323 = vmatprep.mubr.f32.mxu1 %v1003_v0 }
  0x6b   :  { %228 = vmatmul.mubr.f32.gmra.mrb[8].mxu0 %v67_v57  ;;  %324 = vmatmul.mubr.f32.gmra.mrb[8].mxu1 %v83_v58 }
  0x6c   :  { %233 = vmatprep.mubr.f32.mxu0 %v1003_v0  ;;  %329 = vmatprep.mubr.f32.mxu1 %v1003_v0 }
  0x6f   :  { %234 = vmatmul.mubr.f32.gmra.mrb[10].mxu0 %v68_v59  ;;  %330 = vmatmul.mubr.f32.gmra.mrb[10].mxu1 %v84_v60  ;;  %v492_v60 = vld [vmem:[#allocation7] sm:$0xff] }
  0x70   :  { %239 = vmatprep.mubr.f32.mxu0 %v1003_v0  ;;  %335 = vmatprep.mubr.f32.mxu1 %v1003_v0 }
  0x73   :  { %240 = vmatmul.mubr.f32.gmra.mrb[12].mxu0 %v69_v61  ;;  %336 = vmatmul.mubr.f32.gmra.mrb[12].mxu1 %v85_v62 }
  0x74   :  { %245 = vmatprep.mubr.f32.mxu0 %v1003_v0  ;;  %341 = vmatprep.mubr.f32.mxu1 %v1003_v0 }
  0x77   :  { %246 = vmatmul.mubr.f32.gmra.mrb[14].mxu0 %v70_v63  ;;  %342 = vmatmul.mubr.f32.gmra.mrb[14].mxu1 %v86_v1 }
  0x78   :  { %251 = vmatprep.mubr.f32.mxu0 %v1003_v0  ;;  %347 = vmatprep.mubr.f32.mxu1 %v1003_v0 }
  0x7b   :  { %252 = vmatmul.mubr.f32.gmra.mrb[16].mxu0 %v71_v2  ;;  %348 = vmatmul.mubr.f32.gmra.mrb[16].mxu1 %v87_v3  ;;  %v508_v2 = vld [vmem:[#allocation7 + $0x80] sm:$0xff] }
  0x7c   :  { %257 = vmatprep.mubr.f32.mxu0 %v1003_v0  ;;  %353 = vmatprep.mubr.f32.mxu1 %v1003_v0 }
  0x7f   :  { %258 = vmatmul.mubr.f32.gmra.mrb[18].mxu0 %v72_v4  ;;  %354 = vmatmul.mubr.f32.gmra.mrb[18].mxu1 %v88_v5 }
  0x80   :  { %263 = vmatprep.mubr.f32.mxu0 %v1003_v0  ;;  %359 = vmatprep.mubr.f32.mxu1 %v1003_v0 }
  0x83   :  { %264 = vmatmul.mubr.f32.gmra.mrb[20].mxu0 %v73_v6  ;;  %360 = vmatmul.mubr.f32.gmra.mrb[20].mxu1 %v89_v7 }
  0x84   :  { %269 = vmatprep.mubr.f32.mxu0 %v1003_v0  ;;  %365 = vmatprep.mubr.f32.mxu1 %v1003_v0 }
  0x87   :  { %270 = vmatmul.mubr.f32.gmra.mrb[22].mxu0 %v74_v8  ;;  %366 = vmatmul.mubr.f32.gmra.mrb[22].mxu1 %v90_v9  ;;  %v493_v8 = vld [vmem:[#allocation7 + $0x8] sm:$0xff] }
  0x88   :  { %275 = vmatprep.mubr.f32.mxu0 %v1003_v0  ;;  %371 = vmatprep.mubr.f32.mxu1 %v1003_v0 }
  0x8b   :  { %276 = vmatmul.mubr.f32.gmra.mrb[24].mxu0 %v75_v10  ;;  %372 = vmatmul.mubr.f32.gmra.mrb[24].mxu1 %v91_v11 }
  0x8c   :  { %281 = vmatprep.mubr.f32.mxu0 %v1003_v0  ;;  %377 = vmatprep.mubr.f32.mxu1 %v1003_v0 }
  0x8f   :  { %282 = vmatmul.mubr.f32.gmra.mrb[26].mxu0 %v76_v12  ;;  %378 = vmatmul.mubr.f32.gmra.mrb[26].mxu1 %v92_v13 }
  0x90   :  { %287 = vmatprep.mubr.f32.mxu0 %v1003_v0  ;;  %383 = vmatprep.mubr.f32.mxu1 %v1003_v0 }
  0x93   :  { %288 = vmatmul.mubr.f32.gmra.mrb[28].mxu0 %v77_v14  ;;  %384 = vmatmul.mubr.f32.gmra.mrb[28].mxu1 %v93_v15 }
  0x94   :  { %293 = vmatprep.mubr.f32.mxu0 %v1003_v0  ;;  %389 = vmatprep.mubr.f32.mxu1 %v1003_v0 }
  0x97   :  { %294 = vmatmul.mubr.f32.gmra.mrb[30].mxu0 %v78_v16  ;;  %390 = vmatmul.mubr.f32.gmra.mrb[30].mxu1 %v94_v17 }
 0x12e   :  { %v205_v25 = vpop.f32.mrb[0].mxu0  ;;  %v301_v26 = vpop.f32.mrb[0].mxu1 }
 0x12f   :  { %v206_v0 = vadd.f32 %v205_v25, %v1119_v23  ;;  %v1125_v27 = vadd.f32 %v301_v26, %v1119_v23  ;;  %v207_v28 = vpop.f32.mrb[1].mxu0  ;;  %v303_v29 = vpop.f32.mrb[1].mxu1 }
 0x130   :  { %v208_v30 = vadd.f32 %v207_v28, %v1121_v24  ;;  %v304_v31 = vadd.f32 %v303_v29, %v1121_v24  ;;  %v494_v29 = vld [vmem:[#allocation7 + $0x10] sm:$0xff] }
 0x131   :  { %620 = vst [vmem:[#allocation9] sm:$0xff] %v206_v0  ;;  %636 = vst [vmem:[#allocation9 + $0x80] sm:$0xff] %v1125_v27  ;;  %v524_v7 = vadd.f32 %v492_v60, %v206_v0  ;;  %v540_v13 = vadd.f32 %v508_v2, %v1125_v27 }
 0x132   :  { %v396_v32 = vmul.f32 0.5, %v208_v30  ;;  %652 = vst [vmem:[#allocation11] sm:$0xff] %v208_v30  ;;  %v412_v33 = vmul.f32 0.5, %v304_v31  ;;  %668 = vst [vmem:[#allocation11 + $0x80] sm:$0xff] %v304_v31  ;;  %v211_v34 = vpop.f32.mrb[2].mxu0  ;;  %v307_v35 = vpop.f32.mrb[2].mxu1 }
 0x133   :  { %v1131_v36 = vadd.f32 %v211_v34, %v1119_v23  ;;  %v1134_v37 = vadd.f32 %v307_v35, %v1119_v23  ;;  %v213_v38 = vpop.f32.mrb[3].mxu0  ;;  %v309_v39 = vpop.f32.mrb[3].mxu1 }
 0x134   :  { %v428_v40 = vmul.f32 1.442695, %v396_v32  ;;  %v460_v41 = vmul.f32 1.442695, %v412_v33  ;;  %v214_v42 = vadd.f32 %v213_v38, %v1121_v24  ;;  %v310_v43 = vadd.f32 %v309_v39, %v1121_v24 }
 0x135   :  { %621 = vst [vmem:[#allocation9 + $0x8] sm:$0xff] %v1131_v36  ;;  %637 = vst [vmem:[#allocation9 + $0x88] sm:$0xff] %v1134_v37  ;;  %v525_v27 = vadd.f32 %v493_v8, %v1131_v36  ;;  %v541_v34 = vadd.f32 %v509_v19, %v1134_v37  ;;  %v496_v8 = vld [vmem:[#allocation7 + $0x20] sm:$0xff] }
 0x136   :  { %792 = vpow2.f32 %v428_v40  ;;  %v397_v44 = vmul.f32 0.5, %v214_v42  ;;  %653 = vst [vmem:[#allocation11 + $0x8] sm:$0xff] %v214_v42  ;;  %v413_v45 = vmul.f32 0.5, %v310_v43  ;;  %669 = vst [vmem:[#allocation11 + $0x88] sm:$0xff] %v310_v43  ;;  %v217_v46 = vpop.f32.mrb[4].mxu0  ;;  %v313_v47 = vpop.f32.mrb[4].mxu1 }
 0x137   :  { %794 = vpow2.f32 %v460_v41  ;;  %v1141_v48 = vadd.f32 %v217_v46, %v1119_v23  ;;  %v1144_v49 = vadd.f32 %v313_v47, %v1119_v23  ;;  %v219_v50 = vpop.f32.mrb[5].mxu0  ;;  %v315_v51 = vpop.f32.mrb[5].mxu1  ;;  %v510_v41 = vld [vmem:[#allocation7 + $0x90] sm:$0xff] }
 0x138   :  { %v430_v52 = vmul.f32 1.442695, %v397_v44  ;;  %v462_v53 = vmul.f32 1.442695, %v413_v45  ;;  %v220_v54 = vadd.f32 %v219_v50, %v1121_v24  ;;  %v316_v55 = vadd.f32 %v315_v51, %v1121_v24  ;;  %v495_v51 = vld [vmem:[#allocation7 + $0x18] sm:$0xff] }
 0x139   :  { %622 = vst [vmem:[#allocation9 + $0x10] sm:$0xff] %v1141_v48  ;;  %638 = vst [vmem:[#allocation9 + $0x90] sm:$0xff] %v1144_v49  ;;  %v526_v47 = vadd.f32 %v494_v29, %v1141_v48  ;;  %v497_v29 = vld [vmem:[#allocation7 + $0x28] sm:$0xff] }
 0x13a   :  { %796 = vpow2.f32 %v430_v52  ;;  %v398_v56 = vmul.f32 0.5, %v220_v54  ;;  %654 = vst [vmem:[#allocation11 + $0x10] sm:$0xff] %v220_v54  ;;  %v414_v57 = vmul.f32 0.5, %v316_v55  ;;  %670 = vst [vmem:[#allocation11 + $0x90] sm:$0xff] %v316_v55  ;;  %v223_v58 = vpop.f32.mrb[6].mxu0  ;;  %v319_v59 = vpop.f32.mrb[6].mxu1 }
 0x13b   :  { %798 = vpow2.f32 %v462_v53  ;;  %v1151_v61 = vadd.f32 %v223_v58, %v1119_v23  ;;  %v1154_v62 = vadd.f32 %v319_v59, %v1119_v23  ;;  %v225_v63 = vpop.f32.mrb[7].mxu0  ;;  %v321_v1 = vpop.f32.mrb[7].mxu1 }
 0x13c   :  { %v432_v3 = vmul.f32 1.442695, %v398_v56  ;;  %v464_v4 = vmul.f32 1.442695, %v414_v57  ;;  %v226_v5 = vadd.f32 %v225_v63, %v1121_v24  ;;  %v322_v6 = vadd.f32 %v321_v1, %v1121_v24  ;;  %v511_v63 = vld [vmem:[#allocation7 + $0x98] sm:$0xff] }
 0x13d   :  { %623 = vst [vmem:[#allocation9 + $0x18] sm:$0xff] %v1151_v61  ;;  %639 = vst [vmem:[#allocation9 + $0x98] sm:$0xff] %v1154_v62  ;;  %v542_v56 = vadd.f32 %v510_v41, %v1144_v49 }
 0x13e   :  { %800 = vpow2.f32 %v432_v3  ;;  %v399_v9 = vmul.f32 0.5, %v226_v5  ;;  %655 = vst [vmem:[#allocation11 + $0x18] sm:$0xff] %v226_v5  ;;  %v415_v10 = vmul.f32 0.5, %v322_v6  ;;  %671 = vst [vmem:[#allocation11 + $0x98] sm:$0xff] %v322_v6  ;;  %v229_v11 = vpop.f32.mrb[8].mxu0  ;;  %v325_v12 = vpop.f32.mrb[8].mxu1  ;;  %v527_v6 = vadd.f32 %v495_v51, %v1151_v61 }
 0x13f   :  { %802 = vpow2.f32 %v464_v4  ;;  %v1162_v14 = vadd.f32 %v229_v11, %v1119_v23  ;;  %v1165_v15 = vadd.f32 %v325_v12, %v1119_v23  ;;  %v231_v16 = vpop.f32.mrb[9].mxu0  ;;  %v327_v17 = vpop.f32.mrb[9].mxu1  ;;  %v498_v51 = vld [vmem:[#allocation7 + $0x30] sm:$0xff] }
 0x140   :  { %v793_v18 = vpop.eup %792  ;;  %v434_v20 = vmul.f32 1.442695, %v399_v9  ;;  %v466_v21 = vmul.f32 1.442695, %v415_v10  ;;  %v232_v22 = vadd.f32 %v231_v16, %v1121_v24  ;;  %v328_v25 = vadd.f32 %v327_v17, %v1121_v24 }
 0x141   :  { %v795_v26 = vpop.eup %794  ;;  %v556_v0 = vadd.f32 %v793_v18, %v524_v7  ;;  %624 = vst [vmem:[#allocation9 + $0x20] sm:$0xff] %v1162_v14  ;;  %640 = vst [vmem:[#allocation9 + $0xa0] sm:$0xff] %v1165_v15 }
 0x142   :  { %v572_v28 = vadd.f32 %v795_v26, %v540_v13  ;;  %804 = vpow2.f32 %v434_v20  ;;  %v400_v30 = vmul.f32 0.5, %v232_v22  ;;  %656 = vst [vmem:[#allocation11 + $0x20] sm:$0xff] %v232_v22  ;;  %v416_v31 = vmul.f32 0.5, %v328_v25  ;;  %672 = vst [vmem:[#allocation11 + $0xa0] sm:$0xff] %v328_v25  ;;  %v235_v32 = vpop.f32.mrb[10].mxu0  ;;  %v331_v33 = vpop.f32.mrb[10].mxu1 }
 0x143   :  { %588 = vst [vmem:[#allocation8] sm:$0xff] %v556_v0  ;;  %806 = vpow2.f32 %v466_v21  ;;  %v1174_v35 = vadd.f32 %v235_v32, %v1119_v23  ;;  %v1177_v36 = vadd.f32 %v331_v33, %v1119_v23  ;;  %v237_v38 = vpop.f32.mrb[11].mxu0  ;;  %v333_v39 = vpop.f32.mrb[11].mxu1  ;;  %v543_v13 = vadd.f32 %v511_v63, %v1154_v62  ;;  %v512_v20 = vld [vmem:[#allocation7 + $0xa0] sm:$0xff] }
 0x144   :  { %v797_v40 = vpop.eup %796  ;;  %604 = vst [vmem:[#allocation8 + $0x80] sm:$0xff] %v572_v28  ;;  %v436_v42 = vmul.f32 1.442695, %v400_v30  ;;  %v468_v43 = vmul.f32 1.442695, %v416_v31  ;;  %v238_v44 = vadd.f32 %v237_v38, %v1121_v24  ;;  %v334_v45 = vadd.f32 %v333_v39, %v1121_v24 }
 0x145   :  { %v799_v46 = vpop.eup %798  ;;  %v557_v37 = vadd.f32 %v797_v40, %v525_v27  ;;  %625 = vst [vmem:[#allocation9 + $0x28] sm:$0xff] %v1174_v35  ;;  %641 = vst [vmem:[#allocation9 + $0xa8] sm:$0xff] %v1177_v36  ;;  %v528_v27 = vadd.f32 %v496_v8, %v1162_v14  ;;  %v499_v8 = vld [vmem:[#allocation7 + $0x38] sm:$0xff] }
 0x146   :  { %v573_v50 = vadd.f32 %v799_v46, %v541_v34  ;;  %808 = vpow2.f32 %v436_v42  ;;  %v401_v52 = vmul.f32 0.5, %v238_v44  ;;  %657 = vst [vmem:[#allocation11 + $0x28] sm:$0xff] %v238_v44  ;;  %v417_v53 = vmul.f32 0.5, %v334_v45  ;;  %673 = vst [vmem:[#allocation11 + $0xa8] sm:$0xff] %v334_v45  ;;  %v241_v54 = vpop.f32.mrb[12].mxu0  ;;  %v337_v55 = vpop.f32.mrb[12].mxu1 }
 0x147   :  { %589 = vst [vmem:[#allocation8 + $0x8] sm:$0xff] %v557_v37  ;;  %810 = vpow2.f32 %v468_v43  ;;  %v1186_v57 = vadd.f32 %v241_v54, %v1119_v23  ;;  %v1189_v48 = vadd.f32 %v337_v55, %v1119_v23  ;;  %v243_v58 = vpop.f32.mrb[13].mxu0  ;;  %v339_v59 = vpop.f32.mrb[13].mxu1  ;;  %v544_v34 = vadd.f32 %v512_v20, %v1165_v15  ;;  %v513_v42 = vld [vmem:[#allocation7 + $0xa8] sm:$0xff] }
 0x148   :  { %v801_v60 = vpop.eup %800  ;;  %605 = vst [vmem:[#allocation8 + $0x88] sm:$0xff] %v573_v50  ;;  %v438_v1 = vmul.f32 1.442695, %v401_v52  ;;  %v470_v2 = vmul.f32 1.442695, %v417_v53  ;;  %v244_v3 = vadd.f32 %v243_v58, %v1121_v24  ;;  %v340_v4 = vadd.f32 %v339_v59, %v1121_v24 }
 0x149   :  { %v803_v5 = vpop.eup %802  ;;  %v558_v49 = vadd.f32 %v801_v60, %v526_v47  ;;  %626 = vst [vmem:[#allocation9 + $0x30] sm:$0xff] %v1186_v57  ;;  %642 = vst [vmem:[#allocation9 + $0xb0] sm:$0xff] %v1189_v48  ;;  %v529_v47 = vadd.f32 %v497_v29, %v1174_v35  ;;  %v500_v29 = vld [vmem:[#allocation7 + $0x40] sm:$0xff] }
 0x14a   :  { %v574_v7 = vadd.f32 %v803_v5, %v542_v56  ;;  %812 = vpow2.f32 %v438_v1  ;;  %v402_v9 = vmul.f32 0.5, %v244_v3  ;;  %658 = vst [vmem:[#allocation11 + $0x30] sm:$0xff] %v244_v3  ;;  %v418_v10 = vmul.f32 0.5, %v340_v4  ;;  %674 = vst [vmem:[#allocation11 + $0xb0] sm:$0xff] %v340_v4  ;;  %v247_v11 = vpop.f32.mrb[14].mxu0  ;;  %v343_v12 = vpop.f32.mrb[14].mxu1 }
 0x14b   :  { %590 = vst [vmem:[#allocation8 + $0x10] sm:$0xff] %v558_v49  ;;  %814 = vpow2.f32 %v470_v2  ;;  %v1198_v16 = vadd.f32 %v247_v11, %v1119_v23  ;;  %v1201_v61 = vadd.f32 %v343_v12, %v1119_v23  ;;  %v249_v17 = vpop.f32.mrb[15].mxu0  ;;  %v345_v18 = vpop.f32.mrb[15].mxu1  ;;  %v545_v56 = vadd.f32 %v513_v42, %v1177_v36  ;;  %v514_v1 = vld [vmem:[#allocation7 + $0xb0] sm:$0xff] }
 0x14c   :  { %v805_v19 = vpop.eup %804  ;;  %606 = vst [vmem:[#allocation8 + $0x90] sm:$0xff] %v574_v7  ;;  %v440_v21 = vmul.f32 1.442695, %v402_v9  ;;  %v472_v22 = vmul.f32 1.442695, %v418_v10  ;;  %v250_v25 = vadd.f32 %v249_v17, %v1121_v24  ;;  %v346_v26 = vadd.f32 %v345_v18, %v1121_v24 }
 0x14d   :  { %v807_v0 = vpop.eup %806  ;;  %v559_v62 = vadd.f32 %v805_v19, %v527_v6  ;;  %627 = vst [vmem:[#allocation9 + $0x38] sm:$0xff] %v1198_v16  ;;  %643 = vst [vmem:[#allocation9 + $0xb8] sm:$0xff] %v1201_v61  ;;  %v530_v6 = vadd.f32 %v498_v51, %v1186_v57  ;;  %v501_v51 = vld [vmem:[#allocation7 + $0x48] sm:$0xff] }
 0x14e   :  { %v575_v28 = vadd.f32 %v807_v0, %v543_v13  ;;  %816 = vpow2.f32 %v440_v21  ;;  %v403_v30 = vmul.f32 0.5, %v250_v25  ;;  %659 = vst [vmem:[#allocation11 + $0x38] sm:$0xff] %v250_v25  ;;  %v419_v31 = vmul.f32 0.5, %v346_v26  ;;  %675 = vst [vmem:[#allocation11 + $0xb8] sm:$0xff] %v346_v26  ;;  %v253_v32 = vpop.f32.mrb[16].mxu0  ;;  %v349_v33 = vpop.f32.mrb[16].mxu1 }
 0x14f   :  { %591 = vst [vmem:[#allocation8 + $0x18] sm:$0xff] %v559_v62  ;;  %818 = vpow2.f32 %v472_v22  ;;  %v1210_v38 = vadd.f32 %v253_v32, %v1119_v23  ;;  %v1213_v14 = vadd.f32 %v349_v33, %v1119_v23  ;;  %v255_v39 = vpop.f32.mrb[17].mxu0  ;;  %v351_v40 = vpop.f32.mrb[17].mxu1  ;;  %v546_v13 = vadd.f32 %v514_v1, %v1189_v48  ;;  %v515_v21 = vld [vmem:[#allocation7 + $0xb8] sm:$0xff] }
 0x150   :  { %v809_v41 = vpop.eup %808  ;;  %607 = vst [vmem:[#allocation8 + $0x98] sm:$0xff] %v575_v28  ;;  %v442_v43 = vmul.f32 1.442695, %v403_v30  ;;  %v474_v44 = vmul.f32 1.442695, %v419_v31  ;;  %v256_v45 = vadd.f32 %v255_v39, %v1121_v24  ;;  %v352_v46 = vadd.f32 %v351_v40, %v1121_v24 }
 0x151   :  { %v811_v37 = vpop.eup %810  ;;  %v560_v15 = vadd.f32 %v809_v41, %v528_v27  ;;  %628 = vst [vmem:[#allocation9 + $0x40] sm:$0xff] %v1210_v38  ;;  %644 = vst [vmem:[#allocation9 + $0xc0] sm:$0xff] %v1213_v14  ;;  %v531_v27 = vadd.f32 %v499_v8, %v1198_v16  ;;  %v502_v8 = vld [vmem:[#allocation7 + $0x50] sm:$0xff] }
 0x152   :  { %v576_v50 = vadd.f32 %v811_v37, %v544_v34  ;;  %820 = vpow2.f32 %v442_v43  ;;  %v404_v52 = vmul.f32 0.5, %v256_v45  ;;  %660 = vst [vmem:[#allocation11 + $0x40] sm:$0xff] %v256_v45  ;;  %v420_v53 = vmul.f32 0.5, %v352_v46  ;;  %676 = vst [vmem:[#allocation11 + $0xc0] sm:$0xff] %v352_v46  ;;  %v259_v54 = vpop.f32.mrb[18].mxu0  ;;  %v355_v55 = vpop.f32.mrb[18].mxu1 }
 0x153   :  { %592 = vst [vmem:[#allocation8 + $0x20] sm:$0xff] %v560_v15  ;;  %822 = vpow2.f32 %v474_v44  ;;  %v1222_v58 = vadd.f32 %v259_v54, %v1119_v23  ;;  %v1225_v35 = vadd.f32 %v355_v55, %v1119_v23  ;;  %v261_v59 = vpop.f32.mrb[19].mxu0  ;;  %v357_v60 = vpop.f32.mrb[19].mxu1  ;;  %v547_v34 = vadd.f32 %v515_v21, %v1201_v61  ;;  %v516_v43 = vld [vmem:[#allocation7 + $0xc0] sm:$0xff] }
 0x154   :  { %v813_v63 = vpop.eup %812  ;;  %608 = vst [vmem:[#allocation8 + $0xa0] sm:$0xff] %v576_v50  ;;  %v444_v2 = vmul.f32 1.442695, %v404_v52  ;;  %v476_v3 = vmul.f32 1.442695, %v420_v53  ;;  %v262_v4 = vadd.f32 %v261_v59, %v1121_v24  ;;  %v358_v5 = vadd.f32 %v357_v60, %v1121_v24 }
 0x155   :  { %v815_v49 = vpop.eup %814  ;;  %v561_v36 = vadd.f32 %v813_v63, %v529_v47  ;;  %629 = vst [vmem:[#allocation9 + $0x48] sm:$0xff] %v1222_v58  ;;  %645 = vst [vmem:[#allocation9 + $0xc8] sm:$0xff] %v1225_v35  ;;  %v532_v47 = vadd.f32 %v500_v29, %v1210_v38  ;;  %v503_v29 = vld [vmem:[#allocation7 + $0x58] sm:$0xff] }
 0x156   :  { %v577_v7 = vadd.f32 %v815_v49, %v545_v56  ;;  %824 = vpow2.f32 %v444_v2  ;;  %v405_v9 = vmul.f32 0.5, %v262_v4  ;;  %661 = vst [vmem:[#allocation11 + $0x48] sm:$0xff] %v262_v4  ;;  %v421_v10 = vmul.f32 0.5, %v358_v5  ;;  %677 = vst [vmem:[#allocation11 + $0xc8] sm:$0xff] %v358_v5  ;;  %v265_v11 = vpop.f32.mrb[20].mxu0  ;;  %v361_v12 = vpop.f32.mrb[20].mxu1 }
 0x157   :  { %593 = vst [vmem:[#allocation8 + $0x28] sm:$0xff] %v561_v36  ;;  %826 = vpow2.f32 %v476_v3  ;;  %v1234_v17 = vadd.f32 %v265_v11, %v1119_v23  ;;  %v1237_v57 = vadd.f32 %v361_v12, %v1119_v23  ;;  %v267_v18 = vpop.f32.mrb[21].mxu0  ;;  %v363_v19 = vpop.f32.mrb[21].mxu1  ;;  %v548_v56 = vadd.f32 %v516_v43, %v1213_v14  ;;  %v517_v2 = vld [vmem:[#allocation7 + $0xc8] sm:$0xff] }
 0x158   :  { %v817_v20 = vpop.eup %816  ;;  %609 = vst [vmem:[#allocation8 + $0xa8] sm:$0xff] %v577_v7  ;;  %v446_v22 = vmul.f32 1.442695, %v405_v9  ;;  %v478_v25 = vmul.f32 1.442695, %v421_v10  ;;  %v268_v26 = vadd.f32 %v267_v18, %v1121_v24  ;;  %v364_v0 = vadd.f32 %v363_v19, %v1121_v24 }
 0x159   :  { %v819_v62 = vpop.eup %818  ;;  %v562_v48 = vadd.f32 %v817_v20, %v530_v6  ;;  %630 = vst [vmem:[#allocation9 + $0x50] sm:$0xff] %v1234_v17  ;;  %646 = vst [vmem:[#allocation9 + $0xd0] sm:$0xff] %v1237_v57  ;;  %v533_v6 = vadd.f32 %v501_v51, %v1222_v58 }
 0x15a   :  { %v578_v28 = vadd.f32 %v819_v62, %v546_v13  ;;  %828 = vpow2.f32 %v446_v22  ;;  %v406_v30 = vmul.f32 0.5, %v268_v26  ;;  %662 = vst [vmem:[#allocation11 + $0x50] sm:$0xff] %v268_v26  ;;  %v422_v31 = vmul.f32 0.5, %v364_v0  ;;  %678 = vst [vmem:[#allocation11 + $0xd0] sm:$0xff] %v364_v0  ;;  %v271_v32 = vpop.f32.mrb[22].mxu0  ;;  %v367_v33 = vpop.f32.mrb[22].mxu1 }
 0x15b   :  { %594 = vst [vmem:[#allocation8 + $0x30] sm:$0xff] %v562_v48  ;;  %830 = vpow2.f32 %v478_v25  ;;  %v1246_v39 = vadd.f32 %v271_v32, %v1119_v23  ;;  %v1249_v16 = vadd.f32 %v367_v33, %v1119_v23  ;;  %v273_v40 = vpop.f32.mrb[23].mxu0  ;;  %v369_v41 = vpop.f32.mrb[23].mxu1  ;;  %v549_v13 = vadd.f32 %v517_v2, %v1225_v35  ;;  %v518_v22 = vld [vmem:[#allocation7 + $0xd0] sm:$0xff]  ;;  %v504_v2 = vld [vmem:[#allocation7 + $0x60] sm:$0xff] }
 0x15c   :  { %v821_v42 = vpop.eup %820  ;;  %610 = vst [vmem:[#allocation8 + $0xb0] sm:$0xff] %v578_v28  ;;  %v448_v44 = vmul.f32 1.442695, %v406_v30  ;;  %v480_v45 = vmul.f32 1.442695, %v422_v31  ;;  %v274_v46 = vadd.f32 %v273_v40, %v1121_v24  ;;  %v370_v37 = vadd.f32 %v369_v41, %v1121_v24 }
 0x15d   :  { %v823_v15 = vpop.eup %822  ;;  %v563_v61 = vadd.f32 %v821_v42, %v531_v27  ;;  %631 = vst [vmem:[#allocation9 + $0x58] sm:$0xff] %v1246_v39  ;;  %647 = vst [vmem:[#allocation9 + $0xd8] sm:$0xff] %v1249_v16  ;;  %v534_v27 = vadd.f32 %v502_v8, %v1234_v17 }
 0x15e   :  { %v579_v50 = vadd.f32 %v823_v15, %v547_v34  ;;  %832 = vpow2.f32 %v448_v44  ;;  %v407_v52 = vmul.f32 0.5, %v274_v46  ;;  %663 = vst [vmem:[#allocation11 + $0x58] sm:$0xff] %v274_v46  ;;  %v423_v53 = vmul.f32 0.5, %v370_v37  ;;  %679 = vst [vmem:[#allocation11 + $0xd8] sm:$0xff] %v370_v37  ;;  %v277_v54 = vpop.f32.mrb[24].mxu0  ;;  %v373_v55 = vpop.f32.mrb[24].mxu1 }
 0x15f   :  { %595 = vst [vmem:[#allocation8 + $0x38] sm:$0xff] %v563_v61  ;;  %834 = vpow2.f32 %v480_v45  ;;  %v1258_v59 = vadd.f32 %v277_v54, %v1119_v23  ;;  %v1261_v38 = vadd.f32 %v373_v55, %v1119_v23  ;;  %v279_v60 = vpop.f32.mrb[25].mxu0  ;;  %v375_v63 = vpop.f32.mrb[25].mxu1  ;;  %v550_v34 = vadd.f32 %v518_v22, %v1237_v57  ;;  %v519_v44 = vld [vmem:[#allocation7 + $0xd8] sm:$0xff] }
 0x160   :  { %v825_v1 = vpop.eup %824  ;;  %611 = vst [vmem:[#allocation8 + $0xb8] sm:$0xff] %v579_v50  ;;  %v450_v3 = vmul.f32 1.442695, %v407_v52  ;;  %v482_v4 = vmul.f32 1.442695, %v423_v53  ;;  %v280_v5 = vadd.f32 %v279_v60, %v1121_v24  ;;  %v376_v49 = vadd.f32 %v375_v63, %v1121_v24 }
 0x161   :  { %v827_v36 = vpop.eup %826  ;;  %v564_v14 = vadd.f32 %v825_v1, %v532_v47  ;;  %632 = vst [vmem:[#allocation9 + $0x60] sm:$0xff] %v1258_v59  ;;  %648 = vst [vmem:[#allocation9 + $0xe0] sm:$0xff] %v1261_v38  ;;  %v535_v47 = vadd.f32 %v503_v29, %v1246_v39  ;;  %v551_v55 = vadd.f32 %v519_v44, %v1249_v16 }
 0x162   :  { %v580_v7 = vadd.f32 %v827_v36, %v548_v56  ;;  %836 = vpow2.f32 %v450_v3  ;;  %v408_v9 = vmul.f32 0.5, %v280_v5  ;;  %664 = vst [vmem:[#allocation11 + $0x60] sm:$0xff] %v280_v5  ;;  %v424_v10 = vmul.f32 0.5, %v376_v49  ;;  %680 = vst [vmem:[#allocation11 + $0xe0] sm:$0xff] %v376_v49  ;;  %v283_v11 = vpop.f32.mrb[26].mxu0  ;;  %v379_v12 = vpop.f32.mrb[26].mxu1 }
 0x163   :  { %596 = vst [vmem:[#allocation8 + $0x40] sm:$0xff] %v564_v14  ;;  %838 = vpow2.f32 %v482_v4  ;;  %v1270_v18 = vadd.f32 %v283_v11, %v1119_v23  ;;  %v1273_v58 = vadd.f32 %v379_v12, %v1119_v23  ;;  %v285_v19 = vpop.f32.mrb[27].mxu0  ;;  %v381_v20 = vpop.f32.mrb[27].mxu1  ;;  %v520_v36 = vld [vmem:[#allocation7 + $0xe0] sm:$0xff] }
 0x164   :  { %v829_v21 = vpop.eup %828  ;;  %612 = vst [vmem:[#allocation8 + $0xc0] sm:$0xff] %v580_v7  ;;  %v452_v25 = vmul.f32 1.442695, %v408_v9  ;;  %v484_v26 = vmul.f32 1.442695, %v424_v10  ;;  %v286_v0 = vadd.f32 %v285_v19, %v1121_v24  ;;  %v382_v62 = vadd.f32 %v381_v20, %v1121_v24 }
 0x165   :  { %v831_v48 = vpop.eup %830  ;;  %v565_v35 = vadd.f32 %v829_v21, %v533_v6  ;;  %633 = vst [vmem:[#allocation9 + $0x68] sm:$0xff] %v1270_v18  ;;  %649 = vst [vmem:[#allocation9 + $0xe8] sm:$0xff] %v1273_v58 }
 0x166   :  { %v581_v28 = vadd.f32 %v831_v48, %v549_v13  ;;  %840 = vpow2.f32 %v452_v25  ;;  %v409_v30 = vmul.f32 0.5, %v286_v0  ;;  %665 = vst [vmem:[#allocation11 + $0x68] sm:$0xff] %v286_v0  ;;  %v425_v31 = vmul.f32 0.5, %v382_v62  ;;  %681 = vst [vmem:[#allocation11 + $0xe8] sm:$0xff] %v382_v62  ;;  %v289_v32 = vpop.f32.mrb[28].mxu0  ;;  %v385_v33 = vpop.f32.mrb[28].mxu1 }
 0x167   :  { %597 = vst [vmem:[#allocation8 + $0x48] sm:$0xff] %v565_v35  ;;  %842 = vpow2.f32 %v484_v26  ;;  %v1282_v40 = vadd.f32 %v289_v32, %v1119_v23  ;;  %v1285_v17 = vadd.f32 %v385_v33, %v1119_v23  ;;  %v291_v41 = vpop.f32.mrb[29].mxu0  ;;  %v387_v42 = vpop.f32.mrb[29].mxu1 }
 0x168   :  { %v833_v43 = vpop.eup %832  ;;  %613 = vst [vmem:[#allocation8 + $0xc8] sm:$0xff] %v581_v28  ;;  %v454_v45 = vmul.f32 1.442695, %v409_v30  ;;  %v486_v46 = vmul.f32 1.442695, %v425_v31  ;;  %v292_v37 = vadd.f32 %v291_v41, %v1121_v24  ;;  %v388_v15 = vadd.f32 %v387_v42, %v1121_v24 }
 0x169   :  { %v835_v57 = vpop.eup %834  ;;  %v566_v61 = vadd.f32 %v833_v43, %v534_v27  ;;  %634 = vst [vmem:[#allocation9 + $0x70] sm:$0xff] %v1282_v40  ;;  %650 = vst [vmem:[#allocation9 + $0xf0] sm:$0xff] %v1285_v17 }
 0x16a   :  { %v582_v50 = vadd.f32 %v835_v57, %v550_v34  ;;  %844 = vpow2.f32 %v454_v45  ;;  %v410_v51 = vmul.f32 0.5, %v292_v37  ;;  %666 = vst [vmem:[#allocation11 + $0x70] sm:$0xff] %v292_v37  ;;  %v426_v52 = vmul.f32 0.5, %v388_v15  ;;  %682 = vst [vmem:[#allocation11 + $0xf0] sm:$0xff] %v388_v15  ;;  %v295_v53 = vpop.f32.mrb[30].mxu0  ;;  %v391_v54 = vpop.f32.mrb[30].mxu1 }
 0x16b   :  { %598 = vst [vmem:[#allocation8 + $0x50] sm:$0xff] %v566_v61  ;;  %846 = vpow2.f32 %v486_v46  ;;  %v1294_v39 = vadd.f32 %v295_v53, %v1119_v23  ;;  %v1297_v56 = vadd.f32 %v391_v54, %v1119_v23  ;;  %v297_v60 = vpop.f32.mrb[31].mxu0  ;;  %v393_v63 = vpop.f32.mrb[31].mxu1 }
 0x16c   :  { %v837_v1 = vpop.eup %836  ;;  %614 = vst [vmem:[#allocation8 + $0xd0] sm:$0xff] %v582_v50  ;;  %v456_v3 = vmul.f32 1.442695, %v410_v51  ;;  %v488_v4 = vmul.f32 1.442695, %v426_v52  ;;  %v298_v16 = vadd.f32 %v297_v60, %v1121_v24  ;;  %v394_v5 = vadd.f32 %v393_v63, %v1121_v24 }
 0x16d   :  { %v839_v23 = vpop.eup %838  ;;  %v567_v49 = vadd.f32 %v837_v1, %v535_v47  ;;  %635 = vst [vmem:[#allocation9 + $0x78] sm:$0xff] %v1294_v39  ;;  %651 = vst [vmem:[#allocation9 + $0xf8] sm:$0xff] %v1297_v56 }
 0x16e   :  { %v583_v14 = vadd.f32 %v839_v23, %v551_v55  ;;  %848 = vpow2.f32 %v456_v3  ;;  %v411_v6 = vmul.f32 0.5, %v298_v16  ;;  %667 = vst [vmem:[#allocation11 + $0x78] sm:$0xff] %v298_v16  ;;  %v427_v7 = vmul.f32 0.5, %v394_v5  ;;  %683 = vst [vmem:[#allocation11 + $0xf8] sm:$0xff] %v394_v5 }
 0x16f   :  { %933 = shalt.err (!%p930_p0)
}
 0x170   :  { %s934_s18 = scalar_lea.hbm %s1375_s5, 4096 }
 0x171   :  { %p935_p1 = scmp.ne.s32.totalorder %s1375_s5, %s934_s18  ;;  %p938_p2 = scmp.lt.u32.totalorder %s934_s18, %s1375_s5 }
 0x173   :  { %p940_p3 = pnand %p938_p2, %p935_p1 }
 0x175   :  { %943 = shalt.err (!%p940_p3)
}
 0x176   :  { %707 = dma.vmem_to_hbm [thread:$0]  %s1299_s12, 4096, %s1375_s5, [#allocation10], %s1000_s1, %s1000_s1, %s1001_s21   ;;  %599 = vst [vmem:[#allocation8 + $0x58] sm:$0xff] %v567_v49  ;;  %v536_v24 = vadd.f32 %v504_v2, %v1258_v59  ;;  %850 = vpow2.f32 %v488_v4 }
 0x177   :  { %s944_s26 = scalar_lea.vmem %s1303_s14, 4096  ;;  %p949_p5 = scmp.lt.s32.totalorder %s1303_s14, %s1303_s14 }
 0x178   :  { %p945_p4 = scmp.ne.s32.totalorder %s1303_s14, %s944_s26  ;;  %p950_p6 = scmp.lt.s32.totalorder %s944_s26, %s944_s26 }
 0x17a   :  { %p951_p7 = por %p950_p6, %p949_p5 }
 0x17c   :  { %p952_p8 = pnand %p951_p7, %p945_p4 }
 0x17e   :  { %955 = shalt.err (!%p952_p8)
}
 0x17f   :  { %s956_s29 = scalar_lea.hbm %s1376_s6, 4096 }
 0x180   :  { %p957_p9 = scmp.ne.s32.totalorder %s1376_s6, %s956_s29  ;;  %p960_p10 = scmp.lt.u32.totalorder %s956_s29, %s1376_s6 }
 0x182   :  { %p962_p11 = pnand %p960_p10, %p957_p9 }
 0x184   :  { %965 = shalt.err (!%p962_p11)
}
 0x185   :  { %719 = dma.vmem_to_hbm [thread:$0]  %s1303_s14, 4096, %s1376_s6, [#allocation10], %s1000_s1, %s1000_s1, %s1001_s21   ;;  %v841_v59 = vpop.eup %840  ;;  %615 = vst [vmem:[#allocation8 + $0xd8] sm:$0xff] %v583_v14  ;;  %v552_v8 = vadd.f32 %v520_v36, %v1261_v38  ;;  %v505_v9 = vld [vmem:[#allocation7 + $0x68] sm:$0xff]  ;;  %v458_v10 = vmul.f32 1.442695, %v411_v6 }
 0x186   :  { %v490_v11 = vmul.f32 1.442695, %v427_v7  ;;  %v843_v12 = vpop.eup %842  ;;  %v568_v13 = vadd.f32 %v841_v59, %v536_v24  ;;  %v521_v19 = vld [vmem:[#allocation7 + $0xe8] sm:$0xff]  ;;  %v537_v21 = vadd.f32 %v505_v9, %v1270_v18  ;;  %v506_v26 = vld [vmem:[#allocation7 + $0x70] sm:$0xff]  ;;  %v507_v29 = vld [vmem:[#allocation7 + $0x78] sm:$0xff]  ;;  %s1006_s6 = smov [#allocation8]  }
 0x187   :  { %v584_v20 = vadd.f32 %v843_v12, %v552_v8  ;;  %852 = vpow2.f32 %v458_v10  ;;  %v845_v22 = vpop.eup %844  ;;  %v553_v25 = vadd.f32 %v521_v19, %v1273_v58  ;;  %v522_v38 = vld [vmem:[#allocation7 + $0xf0] sm:$0xff]  ;;  %v538_v35 = vadd.f32 %v506_v26, %v1282_v40  ;;  %v523_v31 = vld [vmem:[#allocation7 + $0xf8] sm:$0xff]  ;;  %s689_s10 = sshll.u32 %s1006_s6, 4  ;;  %s690_s10 = int_to_ptr.vmem [resolvable:$true] %s689_s10 }
 0x188   :  { %600 = vst [vmem:[#allocation8 + $0x60] sm:$0xff] %v568_v13  ;;  %854 = vpow2.f32 %v490_v11  ;;  %v847_v0 = vpop.eup %846  ;;  %v569_v62 = vadd.f32 %v845_v22, %v537_v21  ;;  %v554_v28 = vadd.f32 %v522_v38, %v1285_v17  ;;  %v539_v58 = vadd.f32 %v507_v29, %v1294_v39  ;;  %s966_s3 = scalar_lea.vmem %s690_s10, 4096  ;;  %p971_p13 = scmp.lt.s32.totalorder %s690_s10, %s690_s10 }
 0x189   :  { %616 = vst [vmem:[#allocation8 + $0xe0] sm:$0xff] %v584_v20  ;;  %v585_v48 = vadd.f32 %v847_v0, %v553_v25  ;;  %v849_v27 = vpop.eup %848  ;;  %v555_v34 = vadd.f32 %v523_v31, %v1297_v56  ;;  %p967_p12 = scmp.ne.s32.totalorder %s690_s10, %s966_s3  ;;  %p972_p0 = scmp.lt.s32.totalorder %s966_s3, %s966_s3 }
 0x18a   :  { %601 = vst [vmem:[#allocation8 + $0x68] sm:$0xff] %v569_v62  ;;  %v851_v30 = vpop.eup %850  ;;  %v570_v18 = vadd.f32 %v849_v27, %v538_v35 }
 0x18b   :  { %617 = vst [vmem:[#allocation8 + $0xe8] sm:$0xff] %v585_v48  ;;  %v586_v32 = vadd.f32 %v851_v30, %v554_v28  ;;  %p973_p1 = por %p972_p0, %p971_p13 }
 0x18c   :  { %602 = vst [vmem:[#allocation8 + $0x70] sm:$0xff] %v570_v18 }
 0x18d   :  { %618 = vst [vmem:[#allocation8 + $0xf0] sm:$0xff] %v586_v32  ;;  %p974_p2 = pnand %p973_p1, %p967_p12 }
 0x191   :  { %v853_v33 = vpop.eup %852 }
 0x192   :  { %v855_v41 = vpop.eup %854  ;;  %v571_v40 = vadd.f32 %v853_v33, %v539_v58 }
 0x193   :  { %v587_v42 = vadd.f32 %v855_v41, %v555_v34 }
 0x194   :  { %603 = vst [vmem:[#allocation8 + $0x78] sm:$0xff] %v571_v40 }
 0x195   :  { %619 = vst [vmem:[#allocation8 + $0xf8] sm:$0xff] %v587_v42 }
 0x196   :  { %977 = shalt.err (!%p974_p2)
}
 0x197   :  { %s978_s12 = scalar_lea.hbm %s1374_s4, 4096 }
 0x198   :  { %p979_p3 = scmp.ne.s32.totalorder %s1374_s4, %s978_s12  ;;  %p982_p4 = scmp.lt.u32.totalorder %s978_s12, %s1374_s4 }
 0x19a   :  { %p984_p5 = pnand %p982_p4, %p979_p3 }
 0x19c   :  { %987 = shalt.err (!%p984_p5)
}
 0x19d   :  { %695 = dma.vmem_to_hbm [thread:$0]  %s690_s10, 4096, %s1374_s4, [#allocation4], %s1000_s1, %s1000_s1, %s1001_s21  }
 0x19e   :  { %992 = dma.done.wait [#allocation4], 4096  }
 0x19f   :  { %993 = vsyncadd [#allocation4], 4294963200 }
 0x1a0   :  { %994 = dma.done.wait [#allocation10], 8192  }
 0x1a1   :  { %995 = vsyncadd [#allocation10], 4294959104 }
 0x1a2   :  { %729 = vsyncpa [#allocation3], 1 }
 0x1a3   :  { %730 = vsyncpa [#allocation6], 1 }
 0x1a4   :  { %731 = vsyncpa [#allocation4], 1 }
 0x1a5   :  { %732 = vsyncpa [#allocation10], 1 }

</bundles_post_ra>
